<compile_context>
chip_gen: v6e
topology: v6e:2x2x1
jax: 0.10.0
libtpu: 0.0.40
codegen_flags: <defaults>
</compile_context>

<pallas_src>
import functools

import jax
import jax.numpy as jnp
from jax.experimental import pallas as pl
from jax.experimental.pallas import tpu as pltpu

LANES = 128


def _round_up(x, m):
    return ((x + m - 1) // m) * m


def _lane_pad(x):
    return _round_up(max(int(x), 1), LANES)


def _sublane_multiple(itemsize):
    # (8,128) tile for 32-bit, (16,128) for bf16, (32,128) for int8/fp8.
    return 8 * max(1, 4 // int(itemsize))


def _vmem_capacity_bytes():
    try:
        return int(pltpu.get_tpu_info().vmem_capacity_bytes)
    except Exception:
        return 64 * 1024 * 1024  # conservative: v7x physical VMEM


def _detect_num_cores():
    # TODO(synk): no stable public API for TensorCores-per-chip; probe a few names
    # and fall back to 1 (correct everywhere, merely leaves a v7x core idle).
    try:
        info = pltpu.get_tpu_info()
        for attr in ("num_cores", "core_count", "num_tensorcores", "tensor_cores"):
            v = getattr(info, attr, None)
            if v:
                return max(1, min(2, int(v)))
    except Exception:
        pass
    return 1


def aeloss_kernel(logits_ref, labels_ref, rp_ref, rg_ref, out_ref, acc_ref, *,
                  n_true, tile_n, steps_per_core):
    core = pl.program_id(0)
    step = pl.program_id(1)

    @pl.when(step == 0)
    def _init():
        acc_ref[0] = jnp.float32(0.0)
        acc_ref[1] = jnp.float32(0.0)
        acc_ref[2] = jnp.float32(0.0)

    logits = logits_ref[...].astype(jnp.float32)          # (TILE_N, C)
    labels = labels_ref[...]                              # (TILE_N, 1) int32
    tn, c = logits.shape

    # Valid-row mask: the last (ragged) tile and any phantom per-core tiles extend
    # past the true batch size; every sum below is masked BEFORE reducing, so OOB
    # garbage (including inf/NaN from exp) never contaminates the result.
    tile_idx = core * steps_per_core + step
    row = jax.lax.broadcasted_iota(jnp.int32, (tn, 1), 0) + tile_idx * tile_n
    valid = row < n_true                                   # (TILE_N, 1) bool

    # ---- cross entropy: sum over valid rows of (logsumexp - logit[label]) ----
    col = jax.lax.broadcasted_iota(jnp.int32, (tn, c), 1)
    one_hot = col == labels
    row_max = jnp.max(logits, axis=1, keepdims=True)
    lse = jnp.log(jnp.sum(jnp.exp(logits - row_max), axis=1, keepdims=True)) + row_max
    picked = jnp.sum(jnp.where(one_hot, logits, 0.0), axis=1, keepdims=True)
    ce_sum = jnp.sum(jnp.where(valid, lse - picked, 0.0))

    # ---- accuracy: first maximal index (matches torch.argmax tie-breaking) ----
    idx_or_big = jnp.where(logits == row_max, col, jnp.int32(c))
    pred = jnp.min(idx_or_big, axis=1, keepdims=True)
    correct_sum = jnp.sum(jnp.where(valid & (pred == labels), 1.0, 0.0))

    # ---- smooth L1 (beta = 1), tiled along the batch axis, masked per row ----
    diff = jnp.abs(rp_ref[...].astype(jnp.float32) - rg_ref[...].astype(jnp.float32))
    sl1 = jnp.where(diff < 1.0, 0.5 * diff * diff, diff - 0.5)
    sl1_sum = jnp.sum(jnp.where(valid, sl1, 0.0))

    acc_ref[0] += ce_sum
    acc_ref[1] += correct_sum
    acc_ref[2] += sl1_sum

    @pl.when(step == pl.num_programs(1) - 1)
    def _finalize():
        # Per-core partial sums land in lane 0 of sublanes 0..2 of this core's block.
        sub = jax.lax.broadcasted_iota(jnp.int32, (1, 8, 128), 1)
        lane = jax.lax.broadcasted_iota(jnp.int32, (1, 8, 128), 2)
        blk = jnp.where((sub == 0) & (lane == 0), acc_ref[0],
              jnp.where((sub == 1) & (lane == 0), acc_ref[1],
              jnp.where((sub == 2) & (lane == 0), acc_ref[2], 0.0)))
        out_ref[...] = blk


def aeloss(preds, gt, *, max_tile_n=None, num_cores=None):
    """preds = (logits (N,C), reg_pred (N,...)); gt = (labels (N,), reg_gt like reg_pred)."""
    logits, reg_pred = preds
    labels, reg_gt = gt

    n, c = logits.shape
    reg_total = int(reg_pred.size)

    if num_cores is None:
        num_cores = _detect_num_cores()
    num_cores = max(1, int(num_cores))

    # ---- reg operands: natural batch-major layout (free reshape, no pad in the
    #      common case; element grouping is irrelevant because loss2 is a full mean).
    d = -(-reg_total // n)
    if reg_total == n * d:
        rp2d = reg_pred.reshape(n, d)
        rg2d = reg_gt.reshape(n, d)
    else:  # rare: pad both with equal values so extra elements contribute exactly 0
        pad = n * d - reg_total
        rp2d = jnp.pad(reg_pred.reshape(-1), (0, pad)).reshape(n, d)
        rg2d = jnp.pad(reg_gt.reshape(-1), (0, pad)).reshape(n, d)

    labels2d = labels.astype(jnp.int32).reshape(n, 1)

    # ---- tile-size selection from a lane-padding-aware VMEM byte budget ----
    logits_row_bytes = _lane_pad(c) * logits.dtype.itemsize
    labels_row_bytes = LANES * 4                      # (tile_n, 1) i32 pads to 128 lanes
    reg_row_bytes = 2 * _lane_pad(d) * rp2d.dtype.itemsize
    per_row_vmem = logits_row_bytes + labels_row_bytes + reg_row_bytes

    vmem_cap = _vmem_capacity_bytes()
    vmem_limit = int(vmem_cap * 0.75)                 # ~96 MiB v5e/v6e, ~48 MiB v7x
    per_step_budget = vmem_limit // 3                 # x2 double-buffer + headroom

    sub_mult = max(_sublane_multiple(logits.dtype.itemsize),
                   _sublane_multiple(rp2d.dtype.itemsize), 8)

    budget_rows = max(per_step_budget // per_row_vmem, 1)
    if max_tile_n is not None:
        budget_rows = min(budget_rows, int(max_tile_n))
    tile_n = min(budget_rows, _round_up(n, sub_mult))
    tile_n = max(sub_mult, (tile_n // sub_mult) * sub_mult)

    tiles_total = pl.cdiv(n, tile_n)
    steps_per_core = pl.cdiv(tiles_total, num_cores)
    grid = (num_cores, steps_per_core)

    # Phantom per-core tiles (load-imbalance remainder) re-read the last real tile
    # (DMA clamp below) but are fully masked in-kernel by `valid`.
    def _in_idx(core, step):
        t = jnp.minimum(core * steps_per_core + step, tiles_total - 1)
        return (t, 0)

    kernel = functools.partial(
        aeloss_kernel, n_true=n, tile_n=tile_n, steps_per_core=steps_per_core)

    cost = pl.CostEstimate(
        flops=int(6 * n * c + 8 * n + 6 * reg_total),
        transcendentals=int(n * c + n),
        bytes_accessed=int(logits.size * logits.dtype.itemsize + 4 * n
                           + 2 * reg_total * rp2d.dtype.itemsize
                           + num_cores * 8 * 128 * 4),
    )

    parts = pl.pallas_call(
        kernel,
        out_shape=jax.ShapeDtypeStruct((num_cores, 8, 128), jnp.float32),
        grid=grid,
        in_specs=[
            pl.BlockSpec((tile_n, c), _in_idx),
            pl.BlockSpec((tile_n, 1), _in_idx),
            pl.BlockSpec((tile_n, d), _in_idx),
            pl.BlockSpec((tile_n, d), _in_idx),
        ],
        out_specs=pl.BlockSpec((1, 8, 128), lambda core, step: (core, 0, 0)),
        scratch_shapes=[pltpu.SMEM((3,), jnp.float32)],
        compiler_params=pltpu.CompilerParams(
            dimension_semantics=("parallel", "arbitrary"),
            vmem_limit_bytes=vmem_limit),
        cost_estimate=cost,
    )(logits, labels2d, rp2d, rg2d)

    # Cross-core reduction + normalization (trivial scalar work) in the wrapper.
    ce_sum = jnp.sum(parts[:, 0, 0])
    corr_sum = jnp.sum(parts[:, 1, 0])
    sl1_sum = jnp.sum(parts[:, 2, 0])
    loss1 = ce_sum / jnp.float32(n)
    correct = corr_sum / jnp.float32(n)
    loss2 = sl1_sum / jnp.float32(reg_total)
    return loss1 + loss2, correct, loss1, loss2


def _reference(preds, gt):
    """Pure-JAX reference mirroring the PyTorch AEloss.forward."""
    logits, reg_pred = preds
    labels, reg_gt = gt
    labels = labels.astype(jnp.int32)
    logp = jax.nn.log_softmax(logits.astype(jnp.float32), axis=1)
    loss1 = -jnp.mean(jnp.take_along_axis(logp, labels[:, None], axis=1))
    pred = jnp.argmax(logits, axis=1)
    correct = jnp.sum(pred == labels).astype(jnp.float32) / logits.shape[0]
    diff = jnp.abs(reg_pred.astype(jnp.float32) - reg_gt.astype(jnp.float32))
    loss2 = jnp.mean(jnp.where(diff < 1.0, 0.5 * diff * diff, diff - 0.5))
    return loss1 + loss2, correct, loss1, loss2


def _run_case(key, n, c, d, dtype=jnp.float32, **kw):
    k1, k2, k3, k4 = jax.random.split(key, 4)
    logits = jax.random.normal(k1, (n, c), dtype=jnp.float32).astype(dtype)
    labels = jax.random.randint(k2, (n,), 0, c).astype(jnp.float32)  # gt[0] is float, cast inside
    reg_pred = jax.random.normal(k3, (n, d), dtype=jnp.float32).astype(dtype)
    reg_gt = jax.random.normal(k4, (n, d), dtype=jnp.float32).astype(dtype)

    preds = (logits, reg_pred)
    gt = (labels, reg_gt)

    out = jax.block_until_ready(aeloss(preds, gt, **kw))
    ref = _reference(preds, gt)
    for a, b in zip(out, ref):
        assert jnp.allclose(a, b, atol=2e-5, rtol=2e-5), (a, b)


if __name__ == "__main__":
    key = jax.random.PRNGKey(0)
    k_a, k_b, k_c, k_d = jax.random.split(key, 4)

    # Small case matching the module's natural shapes (single grid step).
    _run_case(k_a, n=8, c=16, d=16)

    # Multi-step grid + ragged (unpadded) last tile.
    _run_case(k_b, n=300, c=16, d=16, max_tile_n=128)

    # Two-TensorCore ("parallel" axis) path; correct (serialized) on 1-core chips.
    _run_case(k_c, n=300, c=16, d=16, max_tile_n=128, num_cores=2)

    # bf16 inputs: exercises dtype-aware (16,128) sublane rounding + in-kernel f32 cast.
    _run_case(k_d, n=64, c=16, d=16, dtype=jnp.bfloat16)

    print("KERNEL_OK")
</pallas_src>

<mosaic_0001>
module attributes {stable_mosaic.version = 11 : i64} {
  func.func @aeloss_kernel(%arg0: i32, %arg1: i32, %arg2: memref<8x16xf32, #tpu.memory_space<vmem>>, %arg3: memref<8x1xi32, #tpu.memory_space<vmem>>, %arg4: memref<8x16xf32, #tpu.memory_space<vmem>>, %arg5: memref<8x16xf32, #tpu.memory_space<vmem>>, %arg6: memref<1x8x128xf32, #tpu.memory_space<vmem>>, %arg7: memref<3xf32, #tpu.memory_space<smem>>) attributes {dimension_semantics = [#tpu.dimension_semantics<parallel>, #tpu.dimension_semantics<arbitrary>], iteration_bounds = array<i64: 1, 1>, scalar_prefetch = 0 : i64, scratch_operands = 1 : i64, tpu.core_type = #tpu.core_type<tc>, window_params = [{transform_indices = @transform_0, window_bounds = array<i64: 8, 16>}, {transform_indices = @transform_1, window_bounds = array<i64: 8, 1>}, {transform_indices = @transform_2, window_bounds = array<i64: 8, 16>}, {transform_indices = @transform_3, window_bounds = array<i64: 8, 16>}, {transform_indices = @transform_4, window_bounds = array<i64: 1, 8, 128>}]} {
    %c0_i32 = arith.constant 0 : i32
    %0 = arith.cmpi eq, %arg1, %c0_i32 : i32
    %1 = arith.extui %0 : i1 to i32
    %c0_i32_0 = arith.constant 0 : i32
    %2 = arith.cmpi ne, %1, %c0_i32_0 : i32
    scf.if %2 {
      %cst_29 = arith.constant 0.000000e+00 : f32
      %c0_30 = arith.constant 0 : index
      %83 = memref.load %arg7[%c0_30] : memref<3xf32, #tpu.memory_space<smem>>
      memref.store %cst_29, %arg7[%c0_30] : memref<3xf32, #tpu.memory_space<smem>>
      %cst_31 = arith.constant 0.000000e+00 : f32
      %c1_32 = arith.constant 1 : index
      %84 = memref.load %arg7[%c1_32] : memref<3xf32, #tpu.memory_space<smem>>
      memref.store %cst_31, %arg7[%c1_32] : memref<3xf32, #tpu.memory_space<smem>>
      %cst_33 = arith.constant 0.000000e+00 : f32
      %c2_34 = arith.constant 2 : index
      %85 = memref.load %arg7[%c2_34] : memref<3xf32, #tpu.memory_space<smem>>
      memref.store %cst_33, %arg7[%c2_34] : memref<3xf32, #tpu.memory_space<smem>>
    } else {
    }
    %c0 = arith.constant 0 : index
    %c0_1 = arith.constant 0 : index
    %3 = vector.load %arg2[%c0, %c0_1] : memref<8x16xf32, #tpu.memory_space<vmem>>, vector<8x16xf32>
    %c0_2 = arith.constant 0 : index
    %c0_3 = arith.constant 0 : index
    %4 = vector.load %arg3[%c0_2, %c0_3] : memref<8x1xi32, #tpu.memory_space<vmem>>, vector<8x1xi32>
    %c1_i32 = arith.constant 1 : i32
    %5 = arith.muli %arg0, %c1_i32 : i32
    %6 = arith.addi %5, %arg1 : i32
    %7 = tpu.iota {dimensions = array<i32: 0>} : vector<8x1xi32>
    %c8_i32 = arith.constant 8 : i32
    %8 = arith.muli %6, %c8_i32 : i32
    %9 = vector.broadcast %8 : i32 to vector<8x1xi32>
    %10 = arith.addi %7, %9 : vector<8x1xi32>
    %c8_i32_4 = arith.constant 8 : i32
    %11 = vector.broadcast %c8_i32_4 : i32 to vector<8x1xi32>
    %12 = arith.cmpi slt, %10, %11 : vector<8x1xi32>
    %13 = tpu.iota {dimensions = array<i32: 1>} : vector<8x16xi32>
    %14 = vector.broadcast %4 : vector<8x1xi32> to vector<8x16xi32>
    %15 = arith.cmpi eq, %13, %14 : vector<8x16xi32>
    %cst = arith.constant dense<0xFF800000> : vector<8xf32>
    %16 = vector.multi_reduction <maximumf>, %3, %cst [1] : vector<8x16xf32> to vector<8xf32>
    %17 = vector.shape_cast %16 : vector<8xf32> to vector<8x1xf32>
    %18 = vector.broadcast %17 : vector<8x1xf32> to vector<8x16xf32>
    %19 = arith.subf %3, %18 : vector<8x16xf32>
    %20 = math.exp %19 : vector<8x16xf32>
    %cst_5 = arith.constant dense<0.000000e+00> : vector<8xf32>
    %21 = vector.multi_reduction <add>, %20, %cst_5 [1] : vector<8x16xf32> to vector<8xf32>
    %22 = vector.shape_cast %21 : vector<8xf32> to vector<8x1xf32>
    %23 = math.log %22 : vector<8x1xf32>
    %24 = arith.addf %23, %17 : vector<8x1xf32>
    %cst_6 = arith.constant 0.000000e+00 : f32
    %25 = vector.broadcast %cst_6 : f32 to vector<8x16xf32>
    %26 = arith.select %15, %3, %25 : vector<8x16xi1>, vector<8x16xf32>
    %cst_7 = arith.constant dense<0.000000e+00> : vector<8xf32>
    %27 = vector.multi_reduction <add>, %26, %cst_7 [1] : vector<8x16xf32> to vector<8xf32>
    %28 = vector.shape_cast %27 : vector<8xf32> to vector<8x1xf32>
    %29 = arith.subf %24, %28 : vector<8x1xf32>
    %cst_8 = arith.constant 0.000000e+00 : f32
    %30 = vector.broadcast %cst_8 : f32 to vector<8x1xf32>
    %31 = arith.select %12, %29, %30 : vector<8x1xi1>, vector<8x1xf32>
    %32 = vector.shape_cast %31 : vector<8x1xf32> to vector<1x8x1xf32>
    %cst_9 = arith.constant dense<0.000000e+00> : vector<1xf32>
    %33 = vector.multi_reduction <add>, %32, %cst_9 [1, 2] : vector<1x8x1xf32> to vector<1xf32>
    %34 = vector.shape_cast %33 : vector<1xf32> to vector<1x1x1xf32>
    %35 = vector.extract %34[0, 0, 0] : f32 from vector<1x1x1xf32>
    %36 = vector.broadcast %17 : vector<8x1xf32> to vector<8x16xf32>
    %37 = arith.cmpf oeq, %3, %36 : vector<8x16xf32>
    %c16_i32 = arith.constant 16 : i32
    %38 = vector.broadcast %c16_i32 : i32 to vector<8x16xi32>
    %39 = arith.select %37, %13, %38 : vector<8x16xi1>, vector<8x16xi32>
    %cst_10 = arith.constant dense<2147483647> : vector<8xi32>
    %40 = vector.multi_reduction <minsi>, %39, %cst_10 [1] : vector<8x16xi32> to vector<8xi32>
    %41 = vector.shape_cast %40 : vector<8xi32> to vector<8x1xi32>
    %42 = arith.cmpi eq, %41, %4 : vector<8x1xi32>
    %43 = arith.andi %12, %42 : vector<8x1xi1>
    %cst_11 = arith.constant 1.000000e+00 : f32
    %cst_12 = arith.constant 0.000000e+00 : f32
    %44 = vector.broadcast %cst_11 : f32 to vector<8x1xf32>
    %45 = vector.broadcast %cst_12 : f32 to vector<8x1xf32>
    %46 = arith.select %43, %44, %45 : vector<8x1xi1>, vector<8x1xf32>
    %47 = vector.shape_cast %46 : vector<8x1xf32> to vector<1x8x1xf32>
    %cst_13 = arith.constant dense<0.000000e+00> : vector<1xf32>
    %48 = vector.multi_reduction <add>, %47, %cst_13 [1, 2] : vector<1x8x1xf32> to vector<1xf32>
    %49 = vector.shape_cast %48 : vector<1xf32> to vector<1x1x1xf32>
    %50 = vector.extract %49[0, 0, 0] : f32 from vector<1x1x1xf32>
    %c0_14 = arith.constant 0 : index
    %c0_15 = arith.constant 0 : index
    %51 = vector.load %arg4[%c0_14, %c0_15] : memref<8x16xf32, #tpu.memory_space<vmem>>, vector<8x16xf32>
    %c0_16 = arith.constant 0 : index
    %c0_17 = arith.constant 0 : index
    %52 = vector.load %arg5[%c0_16, %c0_17] : memref<8x16xf32, #tpu.memory_space<vmem>>, vector<8x16xf32>
    %53 = arith.subf %51, %52 : vector<8x16xf32>
    %54 = math.absf %53 : vector<8x16xf32>
    %cst_18 = arith.constant 1.000000e+00 : f32
    %55 = vector.broadcast %cst_18 : f32 to vector<8x16xf32>
    %56 = arith.cmpf olt, %54, %55 : vector<8x16xf32>
    %cst_19 = arith.constant 5.000000e-01 : f32
    %57 = vector.broadcast %cst_19 : f32 to vector<8x16xf32>
    %58 = arith.mulf %57, %54 : vector<8x16xf32>
    %59 = arith.mulf %58, %54 : vector<8x16xf32>
    %cst_20 = arith.constant 5.000000e-01 : f32
    %60 = vector.broadcast %cst_20 : f32 to vector<8x16xf32>
    %61 = arith.subf %54, %60 : vector<8x16xf32>
    %62 = arith.select %56, %59, %61 : vector<8x16xi1>, vector<8x16xf32>
    %cst_21 = arith.constant 0.000000e+00 : f32
    %63 = vector.shape_cast %12 : vector<8x1xi1> to vector<8x1xi1>
    %64 = vector.broadcast %63 : vector<8x1xi1> to vector<8x16xi1>
    %65 = vector.broadcast %cst_21 : f32 to vector<8x16xf32>
    %66 = arith.select %64, %62, %65 : vector<8x16xi1>, vector<8x16xf32>
    %67 = vector.shape_cast %66 : vector<8x16xf32> to vector<1x8x16xf32>
    %cst_22 = arith.constant dense<0.000000e+00> : vector<1xf32>
    %68 = vector.multi_reduction <add>, %67, %cst_22 [1, 2] : vector<1x8x16xf32> to vector<1xf32>
    %69 = vector.shape_cast %68 : vector<1xf32> to vector<1x1x1xf32>
    %70 = vector.extract %69[0, 0, 0] : f32 from vector<1x1x1xf32>
    %c0_23 = arith.constant 0 : index
    %71 = memref.load %arg7[%c0_23] : memref<3xf32, #tpu.memory_space<smem>>
    %72 = arith.addf %71, %35 : f32
    %c0_24 = arith.constant 0 : index
    %73 = memref.load %arg7[%c0_24] : memref<3xf32, #tpu.memory_space<smem>>
    memref.store %72, %arg7[%c0_24] : memref<3xf32, #tpu.memory_space<smem>>
    %c1 = arith.constant 1 : index
    %74 = memref.load %arg7[%c1] : memref<3xf32, #tpu.memory_space<smem>>
    %75 = arith.addf %74, %50 : f32
    %c1_25 = arith.constant 1 : index
    %76 = memref.load %arg7[%c1_25] : memref<3xf32, #tpu.memory_space<smem>>
    memref.store %75, %arg7[%c1_25] : memref<3xf32, #tpu.memory_space<smem>>
    %c2 = arith.constant 2 : index
    %77 = memref.load %arg7[%c2] : memref<3xf32, #tpu.memory_space<smem>>
    %78 = arith.addf %77, %70 : f32
    %c2_26 = arith.constant 2 : index
    %79 = memref.load %arg7[%c2_26] : memref<3xf32, #tpu.memory_space<smem>>
    memref.store %78, %arg7[%c2_26] : memref<3xf32, #tpu.memory_space<smem>>
    %c0_i32_27 = arith.constant 0 : i32
    %80 = arith.cmpi eq, %arg1, %c0_i32_27 : i32
    %81 = arith.extui %80 : i1 to i32
    %c0_i32_28 = arith.constant 0 : i32
    %82 = arith.cmpi ne, %81, %c0_i32_28 : i32
    scf.if %82 {
      %83 = tpu.iota {dimensions = array<i32: 1>} : vector<1x8x128xi32>
      %84 = tpu.iota {dimensions = array<i32: 2>} : vector<1x8x128xi32>
      %c0_i32_29 = arith.constant 0 : i32
      %85 = vector.broadcast %c0_i32_29 : i32 to vector<1x8x128xi32>
      %86 = arith.cmpi eq, %83, %85 : vector<1x8x128xi32>
      %c0_i32_30 = arith.constant 0 : i32
      %87 = vector.broadcast %c0_i32_30 : i32 to vector<1x8x128xi32>
      %88 = arith.cmpi eq, %84, %87 : vector<1x8x128xi32>
      %89 = arith.andi %86, %88 : vector<1x8x128xi1>
      %c0_31 = arith.constant 0 : index
      %90 = memref.load %arg7[%c0_31] : memref<3xf32, #tpu.memory_space<smem>>
      %c1_i32_32 = arith.constant 1 : i32
      %91 = vector.broadcast %c1_i32_32 : i32 to vector<1x8x128xi32>
      %92 = arith.cmpi eq, %83, %91 : vector<1x8x128xi32>
      %c0_i32_33 = arith.constant 0 : i32
      %93 = vector.broadcast %c0_i32_33 : i32 to vector<1x8x128xi32>
      %94 = arith.cmpi eq, %84, %93 : vector<1x8x128xi32>
      %95 = arith.andi %92, %94 : vector<1x8x128xi1>
      %c1_34 = arith.constant 1 : index
      %96 = memref.load %arg7[%c1_34] : memref<3xf32, #tpu.memory_space<smem>>
      %c2_i32 = arith.constant 2 : i32
      %97 = vector.broadcast %c2_i32 : i32 to vector<1x8x128xi32>
      %98 = arith.cmpi eq, %83, %97 : vector<1x8x128xi32>
      %c0_i32_35 = arith.constant 0 : i32
      %99 = vector.broadcast %c0_i32_35 : i32 to vector<1x8x128xi32>
      %100 = arith.cmpi eq, %84, %99 : vector<1x8x128xi32>
      %101 = arith.andi %98, %100 : vector<1x8x128xi1>
      %c2_36 = arith.constant 2 : index
      %102 = memref.load %arg7[%c2_36] : memref<3xf32, #tpu.memory_space<smem>>
      %cst_37 = arith.constant 0.000000e+00 : f32
      %103 = vector.broadcast %102 : f32 to vector<1x8x128xf32>
      %104 = vector.broadcast %cst_37 : f32 to vector<1x8x128xf32>
      %105 = arith.select %101, %103, %104 : vector<1x8x128xi1>, vector<1x8x128xf32>
      %106 = vector.broadcast %96 : f32 to vector<1x8x128xf32>
      %107 = arith.select %95, %106, %105 : vector<1x8x128xi1>, vector<1x8x128xf32>
      %108 = vector.broadcast %90 : f32 to vector<1x8x128xf32>
      %109 = arith.select %89, %108, %107 : vector<1x8x128xi1>, vector<1x8x128xf32>
      %c0_38 = arith.constant 0 : index
      %c0_39 = arith.constant 0 : index
      %c0_40 = arith.constant 0 : index
      %110 = vector.load %arg6[%c0_38, %c0_39, %c0_40] : memref<1x8x128xf32, #tpu.memory_space<vmem>>, vector<1x8x128xf32>
      tpu.vector_store %arg6[%c0_38, %c0_39, %c0_40], %109 {strides = array<i32>} : memref<1x8x128xf32, #tpu.memory_space<vmem>>, vector<1x8x128xf32>,
    } else {
    }
    return
  }
  func.func @transform_0(%arg0: i32, %arg1: i32) -> (i32, i32) {
    %c1_i32 = arith.constant 1 : i32
    %0 = arith.muli %arg0, %c1_i32 : i32
    %1 = arith.addi %0, %arg1 : i32
    %c0_i32 = arith.constant 0 : i32
    %2 = arith.minsi %1, %c0_i32 : i32
    %c0_i32_0 = arith.constant 0 : i32
    %c0_i32_1 = arith.constant 0 : i32
    return %2, %c0_i32_0 : i32, i32
  }
  func.func @transform_1(%arg0: i32, %arg1: i32) -> (i32, i32) {
    %c1_i32 = arith.constant 1 : i32
    %0 = arith.muli %arg0, %c1_i32 : i32
    %1 = arith.addi %0, %arg1 : i32
    %c0_i32 = arith.constant 0 : i32
    %2 = arith.minsi %1, %c0_i32 : i32
    %c0_i32_0 = arith.constant 0 : i32
    %c0_i32_1 = arith.constant 0 : i32
    return %2, %c0_i32_0 : i32, i32
  }
  func.func @transform_2(%arg0: i32, %arg1: i32) -> (i32, i32) {
    %c1_i32 = arith.constant 1 : i32
    %0 = arith.muli %arg0, %c1_i32 : i32
    %1 = arith.addi %0, %arg1 : i32
    %c0_i32 = arith.constant 0 : i32
    %2 = arith.minsi %1, %c0_i32 : i32
    %c0_i32_0 = arith.constant 0 : i32
    %c0_i32_1 = arith.constant 0 : i32
    return %2, %c0_i32_0 : i32, i32
  }
  func.func @transform_3(%arg0: i32, %arg1: i32) -> (i32, i32) {
    %c1_i32 = arith.constant 1 : i32
    %0 = arith.muli %arg0, %c1_i32 : i32
    %1 = arith.addi %0, %arg1 : i32
    %c0_i32 = arith.constant 0 : i32
    %2 = arith.minsi %1, %c0_i32 : i32
    %c0_i32_0 = arith.constant 0 : i32
    %c0_i32_1 = arith.constant 0 : i32
    return %2, %c0_i32_0 : i32, i32
  }
  func.func @transform_4(%arg0: i32, %arg1: i32) -> (i32, i32, i32) {
    %c0_i32 = arith.constant 0 : i32
    %c0_i32_0 = arith.constant 0 : i32
    %c0_i32_1 = arith.constant 0 : i32
    return %arg0, %c0_i32, %c0_i32_0 : i32, i32, i32
  }
}

</mosaic_0001>

<bundles_post_ra>
// kernel: tpu_custom_call.1
= control target key start
LH: loop header
LB: loop body
LE: loop exit
PB: predicated region body
PF: predicated region fallthrough
CT: control target
= control target key end

     0   :  { %9 = vsyncpa [#allocation4], 0  ;;  %s428_s0 = inlined_call_operand.vmem [shape: f32[8,16], index: 0, kind: input, shape index: {}]   ;;  %s429_s1 = inlined_call_operand.vmem [shape: s32[8,1], index: 1, kind: input, shape index: {}]   ;;  %s430_s2 = inlined_call_operand.hbm [shape: f32[8,16], index: 2, kind: input, shape index: {}]   ;;  %s431_s3 = inlined_call_operand.hbm [shape: f32[8,16], index: 3, kind: input, shape index: {}]   ;;  %s432_s4 = inlined_call_operand.hbm [shape: f32[1,8,128], index: 4, kind: output, shape index: {}]  }
   0x1   :  { %10 = vsyncpa [#allocation7], 0 }
   0x2   :  { %11 = vsyncpa [#allocation5], 0  ;;  %s371_s15 = smov [#allocation3]   ;;  %s372_s17 = smov [#allocation6]  }
   0x3   :  { %s47_s16 = sshll.u32 %s371_s15, 4  ;;  %s62_s18 = sshll.u32 %s372_s17, 4  ;;  %s48_s16 = int_to_ptr.vmem [resolvable:$true] %s47_s16  ;;  %s63_s18 = int_to_ptr.vmem [resolvable:$true] %s62_s18 }
   0x4   :  { %s313_s19 = scalar_lea.vmem %s48_s16, 128  ;;  %p318_p1 = scmp.lt.s32.totalorder %s48_s16, %s48_s16 }
   0x5   :  { %p314_p0 = scmp.ne.s32.totalorder %s48_s16, %s313_s19  ;;  %p319_p2 = scmp.lt.s32.totalorder %s313_s19, %s313_s19 }
   0x7   :  { %p320_p3 = por %p319_p2, %p318_p1 }
   0x9   :  { %p321_p4 = pnand %p320_p3, %p314_p0 }
   0xb   :  { %324 = shalt.err (!%p321_p4)
}
   0xc   :  { %50 = dma.hbm_to_vmem [thread:$0]  %s430_s2, 128, %s48_s16, [#allocation4]  }
   0xd   :  { %s333_s22 = scalar_lea.vmem %s63_s18, 128  ;;  %p338_p6 = scmp.lt.s32.totalorder %s63_s18, %s63_s18 }
   0xe   :  { %p334_p5 = scmp.ne.s32.totalorder %s63_s18, %s333_s22  ;;  %p339_p7 = scmp.lt.s32.totalorder %s333_s22, %s333_s22 }
  0x10   :  { %p340_p8 = por %p339_p7, %p338_p6 }
  0x12   :  { %p341_p9 = pnand %p340_p8, %p334_p5 }
  0x14   :  { %344 = shalt.err (!%p341_p9)
}
  0x15   :  { %65 = dma.hbm_to_vmem [thread:$0]  %s431_s3, 128, %s63_s18, [#allocation7]  }
  0x16   :  { %365 = dma.done.wait [#allocation4], 128  }
  0x17   :  { %366 = vsyncadd [#allocation4], 4294967168 }
  0x18   :  { %367 = dma.done.wait [#allocation7], 128  }
  0x19   :  { %368 = vsyncadd [#allocation7], 4294967168  ;;  %v373_v0 = vmov 0   ;;  %vm137_vm0 = vcmask 130048   ;;  %v122_v1 = vld [vmem:[%s428_s0] sm:$0xff]  ;;  %v125_v4 = vlaneseq  ;;  %v198_v24 = vld [vmem:[#allocation6] sm:$0xff] }
  0x1a   :  { %299 = vset.pattern.permute.xlu1 %v373_v0  ;;  %300 = vset.pattern.permute.xlu0 %v373_v0  ;;  %v123_v2 = vld [vmem:[%s429_s1] sm:$0xff]  ;;  %v138_v3 = vsel %vm137_vm0, %v122_v1, -inf  ;;  %vm156_vm4 = vcmask 7168   ;;  %v374_v41 = vmov 0.0   ;;  %s375_s28 = smov [#allocation8]  }
  0x1b   :  { %134 = vperm.xlu1 %299, %v123_v2   ;;  %139 = vmax.xlane.f32.xlu0 %v138_v3  ;;  %v415_v5 = vand.u32 127, %v125_v4  ;;  %v197_v23 = vld [vmem:[#allocation3] sm:$0xff]  ;;  %v126_v3 = vshrl.u32 %v125_v4, 7  ;;  %s257_s29 = sshll.u32 %s375_s28, 4  ;;  %s258_s29 = int_to_ptr.vmem [resolvable:$true] %s257_s29 }
  0x1c   :  { %v199_v25 = vsub.f32 %v197_v23, %v198_v24  ;;  %s345_s30 = scalar_lea.vmem %s258_s29, 128  ;;  %p350_p11 = scmp.lt.s32.totalorder %s258_s29, %s258_s29 }
  0x1d   :  { %vm235_vm7 = vcmp.eq.s32.totalorder %v415_v5, 0  ;;  %vm241_vm8 = vcmp.eq.s32.totalorder %v126_v3, 2  ;;  %vm238_vm9 = vcmp.eq.s32.totalorder %v126_v3, 1  ;;  %vm234_vm10 = vcmp.eq.s32.totalorder %v126_v3, 0  ;;  %p346_p10 = scmp.ne.s32.totalorder %s258_s29, %s345_s30  ;;  %p351_p12 = scmp.lt.s32.totalorder %s345_s30, %s345_s30 }
  0x1e   :  { %v200_v28 = vand.u32 2147483647, %v199_v25  ;;  %vm242_vm11 = vmand %vm241_vm8, %vm235_vm7 }
  0x1f   :  { %vm239_vm12 = vmand %vm238_vm9, %vm235_vm7  ;;  %p352_p13 = por %p351_p12, %p350_p11 }
  0x20   :  { %v202_v33 = vmul.f32 0.5, %v200_v28  ;;  %v283_v39 = vadd.f32 -0.5, %v200_v28  ;;  %vm201_vm6 = vcmp.lt.f32.partialorder %v200_v28, 1.0  ;;  %vm236_vm13 = vmand %vm234_vm10, %vm235_vm7 }
  0x21   :  { %p353_p0 = pnand %p352_p13, %p346_p10 }
  0x22   :  { %v203_v38 = vmul.f32 %v202_v33, %v200_v28 }
  0x24   :  { %v205_v43 = vsel %vm201_vm6, %v203_v38, %v283_v39 }
  0x25   :  { %v209_v45 = vsel %vm137_vm0, %v205_v43, 0.0 }
  0x96   :  { %v135_v15 = vpop.permute.xlu1 %134 }
  0x97   :  { %vm136_vm2 = vcmp.eq.s32.totalorder %v415_v5, %v135_v15 }
  0x98   :  { %v150_v19 = vsel %vm136_vm2, %v122_v1, 0.0 }
  0x99   :  { %v151_v21 = vsel %vm137_vm0, %v150_v19, 0.0 }
  0xa4   :  { %v140_v6 = vpop.xlane.xlu0 %139 }
  0xa5   :  { %v141_v7 = vsub.f32 %v122_v1, %v140_v6  ;;  %vm167_vm1 = vcmp.eq.f32.partialorder %v122_v1, %v140_v6 }
  0xa6   :  { %v168_v8 = vsel %vm167_vm1, %v415_v5, 16 }
  0xa7   :  { %v142_v9 = vmul.f32 1.442695, %v141_v7  ;;  %v169_v10 = vsel %vm137_vm0, %v168_v8, 2147483647 }
  0xa8   :  { %v171_v11 = vshra.s32 %v169_v10, 16  ;;  %v170_v16 = vand.u32 65535, %v169_v10 }
  0xa9   :  { %301 = vpow2.f32 %v142_v9 }
  0xaa   :  { %v173_v12 = vcvt.s32.f32 %v171_v11  ;;  %v172_v18 = vcvt.s32.f32 %v170_v16 }
  0xac   :  { %174 = vmin.xlane.f32.xlu0 %v173_v12 }
  0xb6   :  { %v302_v13 = vpop.eup %301 }
  0xb7   :  { %v144_v14 = vsel %vm137_vm0, %v302_v13, 0.0 }
  0xb8   :  { %145 = vadd.xlane.f32.xlu1 %v144_v14 }
 0x135   :  { %v175_v17 = vpop.xlane.xlu0 %174 }
 0x136   :  { %vm176_vm3 = vcmp.eq.f32.partialorder %v173_v12, %v175_v17  ;;  %v181_v27 = vcvt.f32.s32 %v175_v17 }
 0x137   :  { %v177_v20 = vsel %vm176_vm3, %v172_v18, inf }
 0x138   :  { %178 = vmin.xlane.f32.xlu0 %v177_v20  ;;  %v182_v31 = vshll.u32 %v181_v27, 16 }
 0x13c   :  { %152 = vadd.xlane.f32.xlu0 %v151_v21 }
 0x141   :  { %v146_v22 = vpop.xlane.xlu1 %145 }
 0x142   :  { %303 = vlog2.f32 %v146_v22 }
 0x14f   :  { %v304_v26 = vpop.eup %303 }
 0x150   :  { %v148_v29 = vmul.f32 0.6931472, %v304_v26 }
 0x152   :  { %v149_v35 = vadd.f32 %v148_v29, %v140_v6 }
 0x1c1   :  { %v179_v30 = vpop.xlane.xlu0 %178 }
 0x1c2   :  { %v180_v32 = vcvt.f32.s32 %v179_v30 }
 0x1c4   :  { %v183_v34 = vadd.s32 %v182_v31, %v180_v32 }
 0x1c5   :  { %v153_v36 = vpop.xlane.xlu0 %152 }
 0x1c6   :  { %v154_v37 = vsub.f32 %v149_v35, %v153_v36  ;;  %vm184_vm5 = vcmp.eq.s32.totalorder %v183_v34, %v123_v2 }
 0x1c7   :  { %v186_v42 = vsel %vm184_vm5, 1.0, %v374_v41 }
 0x1c8   :  { %v157_v40 = vsel %vm156_vm4, %v154_v37, 0.0  ;;  %v187_v44 = vsel %vm156_vm4, %v186_v42, 0.0 }
 0x1c9   :  { %158 = vadd.xlane.f32.xlu0 %v157_v40 }
 0x1cd   :  { %188 = vadd.xlane.f32.xlu0 %v187_v44 }
 0x1d1   :  { %210 = vadd.xlane.f32.xlu0 %v209_v45 }
 0x252   :  { %v159_v46 = vpop.xlane.xlu0 %158 }
 0x253   :  { %v160_v47 = vrot.slane %v159_v46, 4 }
 0x255   :  { %v161_v48 = vadd.f32 %v160_v47, %v159_v46 }
 0x256   :  { %v189_v49 = vpop.xlane.xlu0 %188 }
 0x257   :  { %v162_v50 = vrot.slane %v161_v48, 2  ;;  %v190_v51 = vrot.slane %v189_v49, 4 }
 0x259   :  { %v191_v52 = vadd.f32 %v190_v51, %v189_v49  ;;  %v163_v53 = vadd.f32 %v162_v50, %v161_v48 }
 0x25a   :  { %v211_v54 = vpop.xlane.xlu0 %210 }
 0x25b   :  { %v192_v55 = vrot.slane %v191_v52, 2  ;;  %v212_v56 = vrot.slane %v211_v54, 4  ;;  %v164_v57 = vrot.slane %v163_v53, 1 }
 0x25d   :  { %v213_v58 = vadd.f32 %v212_v56, %v211_v54  ;;  %v165_v59 = vadd.f32 %v164_v57, %v163_v53  ;;  %v193_v60 = vadd.f32 %v192_v55, %v191_v52 }
 0x25f   :  { %v214_v61 = vrot.slane %v213_v58, 2  ;;  %288 = vpush %v165_v59  ;;  %v194_v62 = vrot.slane %v193_v60, 1 }
 0x261   :  { %v215_v63 = vadd.f32 %v214_v61, %v213_v58  ;;  %v195_v0 = vadd.f32 %v194_v62, %v193_v60 }
 0x263   :  { %290 = vpush %v195_v0  ;;  %v216_v1 = vrot.slane %v215_v63, 1 }
 0x265   :  { %v217_v2 = vadd.f32 %v216_v1, %v215_v63 }
 0x267   :  { %292 = vpush %v217_v2 }
 0x290   :  { %s289_s0 = spop %288 }
 0x291   :  { %v248_v9 = vstv %s289_s0 }
 0x294   :  { %s291_s1 = spop %290 }
 0x295   :  { %v246_v7 = vstv %s291_s1 }
 0x298   :  { %s293_s3 = spop %292 }
 0x299   :  { %v244_v6 = vstv %s293_s3 }
 0x29a   :  { %v245_v8 = vsel %vm242_vm11, %v244_v6, 0.0 }
 0x29b   :  { %v247_v10 = vsel %vm239_vm12, %v246_v7, %v245_v8 }
 0x29c   :  { %v249_v4 = vsel %vm236_vm13, %v248_v9, %v247_v10 }
 0x29d   :  { %250 = vst [vmem:[#allocation8] sm:$0xff] %v249_v4 }
 0x29e   :  { %356 = shalt.err (!%p353_p0)
}
 0x29f   :  { %260 = dma.vmem_to_hbm [thread:$0]  %s258_s29, 128, %s432_s4, [#allocation5]  }
 0x2a0   :  { %369 = dma.done.wait [#allocation5], 128  }
 0x2a1   :  { %370 = vsyncadd [#allocation5], 4294967168 }
 0x2a2   :  { %264 = vsyncpa [#allocation4], 1 }
 0x2a3   :  { %265 = vsyncpa [#allocation7], 1 }
 0x2a4   :  { %266 = vsyncpa [#allocation5], 1 }

</bundles_post_ra>
